<compile_context>
chip_gen: v6e
topology: v6e:2x2x1
jax: 0.10.0
libtpu: 0.0.40
codegen_flags: <defaults>
</compile_context>

<pallas_src>
import jax
import jax.numpy as jnp
from jax.experimental import pallas as pl
from jax.experimental.pallas import tpu as pltpu

IN_FEATURES = 38
K_PAD = 64          # fc1 contraction dim padded so the MXU never sees K=38
H1, H2 = 128, 64


def mlp_kernel(xT_ref, w1_ref, b1_ref, w2_ref, b2_ref, w3_ref, b3_ref, o_ref):
    xT = xT_ref[...]                                      # (K_PAD, TB) bf16
    # fc1: (128, 64) @ (64, TB) -> (128, TB); bf16 MXU matmul, f32 accumulate.
    h1 = jnp.dot(w1_ref[...], xT, preferred_element_type=jnp.float32)
    h1 = jnp.maximum(h1 + b1_ref[...], 0.0)               # bias + ReLU in f32 (VPU)
    # fc2: (64, 128) @ (128, TB) -> (64, TB)
    h2 = jnp.dot(w2_ref[...], h1.astype(jnp.bfloat16),
                 preferred_element_type=jnp.float32)
    h2 = jnp.maximum(h2 + b2_ref[...], 0.0)
    # fc3 (output width 1): VPU multiply + XLU sublane reduce — no MXU matmul
    # with a single useful result column.
    logits = jnp.sum(h2 * w3_ref[...], axis=0, keepdims=True) + b3_ref[...]
    o_ref[...] = jax.nn.sigmoid(logits)                   # (1, TB) lane-dense store


def actor_net1_forward(x, params, *, batch_tile=512):
    """x: (B, 38) float32 -> (B, 1) float32 sigmoid output."""
    w1, b1, w2, b2, w3, b3 = params
    B = x.shape[0]

    # Layout plumbing (outside the kernel): pad features, pad batch to a tile
    # multiple, transpose so batch is the lane axis, cast activations to bf16.
    bpad = (B + 127) // 128 * 128
    tb = min(batch_tile, bpad)
    bpad = (bpad + tb - 1) // tb * tb
    grid = (bpad // tb,)
    xT = jnp.pad(x, ((0, bpad - B), (0, K_PAD - x.shape[1]))).T.astype(jnp.bfloat16)

    const = lambda i: (0, 0)   # weights/biases: same block for every batch tile
    bytes_accessed = (xT.size * 2 + w1.size * 2 + w2.size * 2
                      + 4 * (b1.size + b2.size + w3.size + b3.size) + 4 * bpad)

    out = pl.pallas_call(
        mlp_kernel,
        out_shape=jax.ShapeDtypeStruct((1, bpad), jnp.float32),
        grid=grid,
        in_specs=[
            pl.BlockSpec((K_PAD, tb), lambda i: (0, i)),   # x^T batch tile
            pl.BlockSpec(w1.shape, const),
            pl.BlockSpec(b1.shape, const),
            pl.BlockSpec(w2.shape, const),
            pl.BlockSpec(b2.shape, const),
            pl.BlockSpec(w3.shape, const),
            pl.BlockSpec(b3.shape, const),
        ],
        out_specs=pl.BlockSpec((1, tb), lambda i: (0, i)),
        compiler_params=pltpu.CompilerParams(dimension_semantics=("parallel",)),
        cost_estimate=pl.CostEstimate(
            flops=2 * bpad * (K_PAD * H1 + H1 * H2 + H2),
            transcendentals=bpad,
            bytes_accessed=bytes_accessed,
        ),
    )(xT, w1, b1, w2, b2, w3, b3)
    return out[0, :B].reshape(B, 1)


def init_params(key):
    """Deterministic init matching nn.Linear(38,128)/(128,64)/(64,1).

    Weights kept in PyTorch (out, in) layout so the transposed-orientation
    kernel needs no in-kernel transposes.  fc1's input dim is zero-padded
    38->64; fc1/fc2 weights stored in bf16 (MXU operands); fc3 weight stored as
    an f32 (64, 1) column for the VPU reduce.
    """
    ks = jax.random.split(key, 6)

    def linear(kw, kb, fan_in, fan_out):
        bound = fan_in ** -0.5
        w = jax.random.uniform(kw, (fan_out, fan_in), jnp.float32, -bound, bound)
        b = jax.random.uniform(kb, (fan_out, 1), jnp.float32, -bound, bound)
        return w, b

    w1, b1 = linear(ks[0], ks[1], IN_FEATURES, H1)
    w2, b2 = linear(ks[2], ks[3], H1, H2)
    w3, b3 = linear(ks[4], ks[5], H2, 1)

    w1 = jnp.pad(w1, ((0, 0), (0, K_PAD - IN_FEATURES))).astype(jnp.bfloat16)  # (128, 64)
    w2 = w2.astype(jnp.bfloat16)                                               # (64, 128)
    w3 = w3.T                                                                  # (64, 1) f32
    return (w1, b1, w2, b2, w3, b3)


if __name__ == "__main__":
    key = jax.random.PRNGKey(0)
    k_params, k_x, k_x2 = jax.random.split(key, 3)
    params = init_params(k_params)
    w1, b1, w2, b2, w3, b3 = params

    def ref_bf16(xf):
        # Pure-JAX reference with identical bf16-operand / f32-accumulate math.
        xb = jnp.pad(xf, ((0, 0), (0, K_PAD - xf.shape[1]))).astype(jnp.bfloat16)
        h = jnp.maximum(jnp.dot(xb, w1.T, preferred_element_type=jnp.float32) + b1.T, 0.0)
        h = jnp.maximum(jnp.dot(h.astype(jnp.bfloat16), w2.T,
                                preferred_element_type=jnp.float32) + b2.T, 0.0)
        return jax.nn.sigmoid(h @ w3 + b3)

    def ref_f32(xf):
        # PyTorch-equivalent f32 math (weights are bf16-quantized -> loose tol).
        h = jax.nn.relu(xf @ w1.astype(jnp.float32)[:, :xf.shape[1]].T + b1.T)
        h = jax.nn.relu(h @ w2.astype(jnp.float32).T + b2.T)
        return jax.nn.sigmoid(h @ w3 + b3)

    # Small batch (single tile, single kernel invocation).
    B = 8
    x = jax.random.normal(k_x, (B, IN_FEATURES), jnp.float32)
    out = jax.block_until_ready(actor_net1_forward(x, params))
    assert out.shape == (B, 1)
    assert jnp.allclose(out, ref_bf16(x), atol=1e-3), "mismatch vs bf16 reference"
    assert jnp.allclose(out, ref_f32(x), atol=2e-2), "mismatch vs f32 reference"

    # Larger batch exercising the 1-D 'parallel' batch grid (2 tiles of 512).
    B2 = 1000
    x2 = jax.random.normal(k_x2, (B2, IN_FEATURES), jnp.float32)
    out2 = jax.block_until_ready(actor_net1_forward(x2, params))
    assert out2.shape == (B2, 1)
    assert jnp.allclose(out2, ref_bf16(x2), atol=1e-3), "mismatch vs bf16 reference (gridded)"

    print("KERNEL_OK")
</pallas_src>

<mosaic_0001>
module attributes {stable_mosaic.version = 11 : i64} {
  func.func @mlp_kernel(%arg0: i32, %arg1: memref<64x128xbf16, #tpu.memory_space<vmem>>, %arg2: memref<128x64xbf16, #tpu.memory_space<vmem>>, %arg3: memref<128x1xf32, #tpu.memory_space<vmem>>, %arg4: memref<64x128xbf16, #tpu.memory_space<vmem>>, %arg5: memref<64x1xf32, #tpu.memory_space<vmem>>, %arg6: memref<64x1xf32, #tpu.memory_space<vmem>>, %arg7: memref<1x1xf32, #tpu.memory_space<vmem>>, %arg8: memref<1x128xf32, #tpu.memory_space<vmem>>) attributes {dimension_semantics = [#tpu.dimension_semantics<parallel>], iteration_bounds = array<i64: 1>, scalar_prefetch = 0 : i64, scratch_operands = 0 : i64, tpu.core_type = #tpu.core_type<tc>, window_params = [{transform_indices = @transform_0, window_bounds = array<i64: 64, 128>}, {pipeline_mode = #tpu.pipeline_mode<synchronous>, transform_indices = @transform_1, window_bounds = array<i64: 128, 64>}, {pipeline_mode = #tpu.pipeline_mode<synchronous>, transform_indices = @transform_2, window_bounds = array<i64: 128, 1>}, {pipeline_mode = #tpu.pipeline_mode<synchronous>, transform_indices = @transform_3, window_bounds = array<i64: 64, 128>}, {pipeline_mode = #tpu.pipeline_mode<synchronous>, transform_indices = @transform_4, window_bounds = array<i64: 64, 1>}, {pipeline_mode = #tpu.pipeline_mode<synchronous>, transform_indices = @transform_5, window_bounds = array<i64: 64, 1>}, {pipeline_mode = #tpu.pipeline_mode<synchronous>, transform_indices = @transform_6, window_bounds = array<i64: 1, 1>}, {transform_indices = @transform_7, window_bounds = array<i64: 1, 128>}]} {
    %c0 = arith.constant 0 : index
    %c0_0 = arith.constant 0 : index
    %0 = vector.load %arg1[%c0, %c0_0] : memref<64x128xbf16, #tpu.memory_space<vmem>>, vector<64x128xbf16>
    %c0_1 = arith.constant 0 : index
    %c0_2 = arith.constant 0 : index
    %1 = vector.load %arg2[%c0_1, %c0_2] : memref<128x64xbf16, #tpu.memory_space<vmem>>, vector<128x64xbf16>
    %cst = arith.constant dense<0.000000e+00> : vector<128x128xf32>
    %2 = tpu.matmul %1, %0, %cst {dimension_numbers = #tpu.dot_dimension_numbers<[1], [0], [0], [1], [0, 0, 1, 1], [], []>} : vector<128x64xbf16>, vector<64x128xbf16>, vector<128x128xf32> -> vector<128x128xf32>
    %c0_3 = arith.constant 0 : index
    %c0_4 = arith.constant 0 : index
    %3 = vector.load %arg3[%c0_3, %c0_4] : memref<128x1xf32, #tpu.memory_space<vmem>>, vector<128x1xf32>
    %4 = vector.broadcast %3 : vector<128x1xf32> to vector<128x128xf32>
    %5 = arith.addf %2, %4 : vector<128x128xf32>
    %cst_5 = arith.constant 0.000000e+00 : f32
    %6 = vector.broadcast %cst_5 : f32 to vector<128x128xf32>
    %7 = arith.maximumf %5, %6 : vector<128x128xf32>
    %c0_6 = arith.constant 0 : index
    %c0_7 = arith.constant 0 : index
    %8 = vector.load %arg4[%c0_6, %c0_7] : memref<64x128xbf16, #tpu.memory_space<vmem>>, vector<64x128xbf16>
    %9 = arith.truncf %7 : vector<128x128xf32> to vector<128x128xbf16>
    %cst_8 = arith.constant dense<0.000000e+00> : vector<64x128xf32>
    %10 = tpu.matmul %8, %9, %cst_8 {dimension_numbers = #tpu.dot_dimension_numbers<[1], [0], [0], [1], [0, 0, 1, 1], [], []>} : vector<64x128xbf16>, vector<128x128xbf16>, vector<64x128xf32> -> vector<64x128xf32>
    %c0_9 = arith.constant 0 : index
    %c0_10 = arith.constant 0 : index
    %11 = vector.load %arg5[%c0_9, %c0_10] : memref<64x1xf32, #tpu.memory_space<vmem>>, vector<64x1xf32>
    %12 = vector.broadcast %11 : vector<64x1xf32> to vector<64x128xf32>
    %13 = arith.addf %10, %12 : vector<64x128xf32>
    %cst_11 = arith.constant 0.000000e+00 : f32
    %14 = vector.broadcast %cst_11 : f32 to vector<64x128xf32>
    %15 = arith.maximumf %13, %14 : vector<64x128xf32>
    %c0_12 = arith.constant 0 : index
    %c0_13 = arith.constant 0 : index
    %16 = vector.load %arg6[%c0_12, %c0_13] : memref<64x1xf32, #tpu.memory_space<vmem>>, vector<64x1xf32>
    %17 = vector.broadcast %16 : vector<64x1xf32> to vector<64x128xf32>
    %18 = arith.mulf %15, %17 : vector<64x128xf32>
    %cst_14 = arith.constant dense<0.000000e+00> : vector<128xf32>
    %19 = vector.multi_reduction <add>, %18, %cst_14 [0] : vector<64x128xf32> to vector<128xf32>
    %20 = vector.shape_cast %19 : vector<128xf32> to vector<1x128xf32>
    %c0_15 = arith.constant 0 : index
    %c0_16 = arith.constant 0 : index
    %21 = vector.load %arg7[%c0_15, %c0_16] : memref<1x1xf32, #tpu.memory_space<vmem>>, vector<1x1xf32>
    %22 = vector.broadcast %21 : vector<1x1xf32> to vector<1x128xf32>
    %23 = arith.addf %20, %22 : vector<1x128xf32>
    %24 = arith.negf %23 : vector<1x128xf32>
    %25 = math.exp %24 : vector<1x128xf32>
    %cst_17 = arith.constant 1.000000e+00 : f32
    %26 = vector.broadcast %cst_17 : f32 to vector<1x128xf32>
    %27 = arith.addf %26, %25 : vector<1x128xf32>
    %28 = arith.divf %26, %27 : vector<1x128xf32>
    %c0_18 = arith.constant 0 : index
    %c0_19 = arith.constant 0 : index
    %29 = vector.load %arg8[%c0_18, %c0_19] : memref<1x128xf32, #tpu.memory_space<vmem>>, vector<1x128xf32>
    tpu.vector_store %arg8[%c0_18, %c0_19], %28 {strides = array<i32>} : memref<1x128xf32, #tpu.memory_space<vmem>>, vector<1x128xf32>,
    return
  }
  func.func @transform_0(%arg0: i32) -> (i32, i32) {
    %c0_i32 = arith.constant 0 : i32
    %c0_i32_0 = arith.constant 0 : i32
    return %c0_i32, %arg0 : i32, i32
  }
  func.func @transform_1(%arg0: i32) -> (i32, i32) {
    %c0_i32 = arith.constant 0 : i32
    %c0_i32_0 = arith.constant 0 : i32
    %c0_i32_1 = arith.constant 0 : i32
    return %c0_i32, %c0_i32_0 : i32, i32
  }
  func.func @transform_2(%arg0: i32) -> (i32, i32) {
    %c0_i32 = arith.constant 0 : i32
    %c0_i32_0 = arith.constant 0 : i32
    %c0_i32_1 = arith.constant 0 : i32
    return %c0_i32, %c0_i32_0 : i32, i32
  }
  func.func @transform_3(%arg0: i32) -> (i32, i32) {
    %c0_i32 = arith.constant 0 : i32
    %c0_i32_0 = arith.constant 0 : i32
    %c0_i32_1 = arith.constant 0 : i32
    return %c0_i32, %c0_i32_0 : i32, i32
  }
  func.func @transform_4(%arg0: i32) -> (i32, i32) {
    %c0_i32 = arith.constant 0 : i32
    %c0_i32_0 = arith.constant 0 : i32
    %c0_i32_1 = arith.constant 0 : i32
    return %c0_i32, %c0_i32_0 : i32, i32
  }
  func.func @transform_5(%arg0: i32) -> (i32, i32) {
    %c0_i32 = arith.constant 0 : i32
    %c0_i32_0 = arith.constant 0 : i32
    %c0_i32_1 = arith.constant 0 : i32
    return %c0_i32, %c0_i32_0 : i32, i32
  }
  func.func @transform_6(%arg0: i32) -> (i32, i32) {
    %c0_i32 = arith.constant 0 : i32
    %c0_i32_0 = arith.constant 0 : i32
    %c0_i32_1 = arith.constant 0 : i32
    return %c0_i32, %c0_i32_0 : i32, i32
  }
  func.func @transform_7(%arg0: i32) -> (i32, i32) {
    %c0_i32 = arith.constant 0 : i32
    %c0_i32_0 = arith.constant 0 : i32
    return %c0_i32, %arg0 : i32, i32
  }
}

</mosaic_0001>

<bundles_post_ra>
// kernel: tpu_custom_call.1
= control target key start
LH: loop header
LB: loop body
LE: loop exit
PB: predicated region body
PF: predicated region fallthrough
CT: control target
= control target key end

     0   :  { %s966_s0 = inlined_call_operand.vmem [shape: bf16[64,128], index: 0, kind: input, shape index: {}]   ;;  %s967_s1 = inlined_call_operand.vmem [shape: bf16[128,64], index: 1, kind: input, shape index: {}]   ;;  %s968_s2 = inlined_call_operand.vmem [shape: f32[128,1], index: 2, kind: input, shape index: {}]   ;;  %s969_s3 = inlined_call_operand.vmem [shape: bf16[64,128], index: 3, kind: input, shape index: {}]   ;;  %s970_s4 = inlined_call_operand.vmem [shape: f32[64,1], index: 4, kind: input, shape index: {}]   ;;  %s971_s5 = inlined_call_operand.vmem [shape: f32[64,1], index: 5, kind: input, shape index: {}]   ;;  %s972_s6 = inlined_call_operand.<no memory space> [shape: f32[1,1], index: 6, kind: input, shape index: {}]   ;;  %s973_s7 = inlined_call_operand.hbm [shape: f32[1,128], index: 7, kind: output, shape index: {}]  }
   0x1   :  { %v12_v0 = vstv %s972_s6 }
   0x2   :  { %13 = vst [vmem:[#allocation2] sm:$0x1] %v12_v0 }
   0x3   :  { %v715_v1 = vld [vmem:[%s966_s0 + $0x18] sm:$0xff]   ;;  %v716_v2 = vld [vmem:[%s966_s0 + $0x10] sm:$0xff]   ;;  %v757_v3 = vmov 0   ;;  %v717_v4 = vld [vmem:[%s966_s0 + $0x8] sm:$0xff]   ;;  %vm214_vm0 = vcmask 523264  }
   0x4   :  { %663 = vmatprep.subr.bf16.mxu0 %v715_v1  ;;  %713 = vset.pattern.permute.xlu0 %v757_v3  ;;  %v719_v5 = vld [vmem:[%s967_s1] sm:$0xff]   ;;  %v68_v7 = vld [vmem:[%s968_s2 + $0x70] sm:$0xff]  ;;  %v720_v9 = vld [vmem:[%s967_s1 + $0x8] sm:$0xff]  }
   0x5   :  { %664 = vmatpush3.bf16.msra.mxu0 %v715_v1  ;;  %714 = vset.pattern.permute.xlu1 %v757_v3  ;;  %v718_v6 = vld [vmem:[%s966_s0] sm:$0xff]   ;;  %v69_v10 = vld [vmem:[%s968_s2 + $0x78] sm:$0xff]  ;;  %v67_v11 = vld [vmem:[%s968_s2 + $0x68] sm:$0xff] }
   0x6   :  { %665 = vmatprep.subr.bf16.mxu0 %v716_v2  ;;  %671 = vmatprep.mubr.msk.bf16.mxu0 %vm214_vm0, %v719_v5  ;;  %v66_v8 = vld [vmem:[%s968_s2 + $0x60] sm:$0xff]  ;;  %v721_v12 = vld [vmem:[%s967_s1 + $0x10] sm:$0xff]   ;;  %v65_v14 = vld [vmem:[%s968_s2 + $0x58] sm:$0xff] }
   0x7   :  { %142 = vperm.xlu0 %713, %v68_v7   ;;  %132 = vperm.xlu1 %714, %v66_v8   ;;  %v64_v13 = vld [vmem:[%s968_s2 + $0x50] sm:$0xff]  ;;  %v722_v15 = vld [vmem:[%s967_s1 + $0x18] sm:$0xff]   ;;  %v723_v16 = vld [vmem:[%s967_s1 + $0x20] sm:$0xff]  }
   0x8   :  { %v62_v17 = vld [vmem:[%s968_s2 + $0x40] sm:$0xff]  ;;  %v63_v18 = vld [vmem:[%s968_s2 + $0x48] sm:$0xff] }
   0x9   :  { %666 = vmatpush3.bf16.msra.mxu0 %v716_v2 }
   0xa   :  { %667 = vmatprep.subr.bf16.mxu0 %v717_v4 }
   0xb   :  { %147 = vperm.xlu0 %713, %v69_v10   ;;  %137 = vperm.xlu1 %714, %v67_v11  }
   0xd   :  { %668 = vmatpush3.bf16.msra.mxu0 %v717_v4 }
   0xe   :  { %669 = vmatprep.subr.bf16.mxu0 %v718_v6 }
   0xf   :  { %122 = vperm.xlu0 %713, %v64_v13   ;;  %127 = vperm.xlu1 %714, %v65_v14  }
  0x11   :  { %670 = vmatpush3.bf16.msra.mxu0 %v718_v6 }
  0x13   :  { %112 = vperm.xlu0 %713, %v62_v17   ;;  %117 = vperm.xlu1 %714, %v63_v18  }
  0x14   :  { %672 = vmatmul.mubr.msk.bf16.vlgmr.msra.gmra.mxu0 %vm214_vm0, %v720_v9 }
  0x15   :  { %675 = vmatprep.mubr.msk.bf16.mxu0 %vm214_vm0, %v721_v12 }
  0x16   :  { %14 = vsyncpa [#allocation4], 0  ;;  %v60_v19 = vld [vmem:[%s968_s2 + $0x30] sm:$0xff]  ;;  %v61_v20 = vld [vmem:[%s968_s2 + $0x38] sm:$0xff] }
  0x17   :  { %102 = vperm.xlu0 %713, %v60_v19   ;;  %107 = vperm.xlu1 %714, %v61_v20   ;;  %v724_v21 = vld [vmem:[%s967_s1 + $0x28] sm:$0xff]   ;;  %v58_v22 = vld [vmem:[%s968_s2 + $0x20] sm:$0xff]  ;;  %v725_v24 = vld [vmem:[%s967_s1 + $0x30] sm:$0xff]  }
  0x18   :  { %v59_v23 = vld [vmem:[%s968_s2 + $0x28] sm:$0xff]  ;;  %v56_v25 = vld [vmem:[%s968_s2 + $0x10] sm:$0xff]  ;;  %v57_v26 = vld [vmem:[%s968_s2 + $0x18] sm:$0xff] }
  0x19   :  { %v726_v27 = vld [vmem:[%s967_s1 + $0x38] sm:$0xff]   ;;  %v54_v28 = vld [vmem:[%s968_s2] sm:$0xff]  ;;  %v55_v29 = vld [vmem:[%s968_s2 + $0x8] sm:$0xff] }
  0x1a   :  { %v368_v30 = vld [vmem:[%s970_s4] sm:$0xff]  ;;  %v369_v31 = vld [vmem:[%s970_s4 + $0x8] sm:$0xff]  ;;  %v370_v32 = vld [vmem:[%s970_s4 + $0x10] sm:$0xff] }
  0x1b   :  { %92 = vperm.xlu0 %713, %v58_v22   ;;  %97 = vperm.xlu1 %714, %v59_v23   ;;  %v371_v33 = vld [vmem:[%s970_s4 + $0x18] sm:$0xff]  ;;  %v513_v34 = vld [vmem:[%s971_s5] sm:$0xff]  ;;  %v514_v35 = vld [vmem:[%s971_s5 + $0x8] sm:$0xff] }
  0x1c   :  { %676 = vmatmul.mubr.msk.bf16.gmra.mxu0 %vm214_vm0, %v722_v15  ;;  %v372_v36 = vld [vmem:[%s970_s4 + $0x20] sm:$0xff]  ;;  %v515_v37 = vld [vmem:[%s971_s5 + $0x10] sm:$0xff]  ;;  %v373_v38 = vld [vmem:[%s970_s4 + $0x28] sm:$0xff] }
  0x1d   :  { %679 = vmatprep.mubr.msk.bf16.mxu0 %vm214_vm0, %v723_v16  ;;  %v516_v39 = vld [vmem:[%s971_s5 + $0x18] sm:$0xff]  ;;  %v374_v40 = vld [vmem:[%s970_s4 + $0x30] sm:$0xff]  ;;  %v517_v41 = vld [vmem:[%s971_s5 + $0x20] sm:$0xff] }
  0x1e   :  { %v375_v42 = vld [vmem:[%s970_s4 + $0x38] sm:$0xff]  ;;  %v518_v43 = vld [vmem:[%s971_s5 + $0x28] sm:$0xff]  ;;  %v519_v44 = vld [vmem:[%s971_s5 + $0x30] sm:$0xff] }
  0x1f   :  { %82 = vperm.xlu0 %713, %v56_v25   ;;  %87 = vperm.xlu1 %714, %v57_v26   ;;  %v520_v45 = vld [vmem:[%s971_s5 + $0x38] sm:$0xff]  ;;  %v582_v46 = vld [vmem:[#allocation2] sm:$0x1] }
  0x20   :  { %v727_v47 = vld [vmem:[%s969_s3] sm:$0xff]  }
  0x21   :  { %703 = vmatprep.mubr.bf16.mxu1 %v727_v47 }
  0x23   :  { %72 = vperm.xlu0 %713, %v54_v28   ;;  %77 = vperm.xlu1 %714, %v55_v29  }
  0x24   :  { %680 = vmatmul.mubr.msk.bf16.gmra.mxu0 %vm214_vm0, %v724_v21 }
  0x25   :  { %683 = vmatprep.mubr.msk.bf16.mxu0 %vm214_vm0, %v725_v24 }
  0x27   :  { %378 = vperm.xlu0 %713, %v368_v30   ;;  %383 = vperm.xlu1 %714, %v369_v31  }
  0x2b   :  { %388 = vperm.xlu0 %713, %v370_v32   ;;  %393 = vperm.xlu1 %714, %v371_v33  }
  0x2c   :  { %684 = vmatmul.mubr.msk.bf16.gmra.mxu0 %vm214_vm0, %v726_v27 }
  0x2f   :  { %523 = vperm.xlu0 %713, %v513_v34   ;;  %528 = vperm.xlu1 %714, %v514_v35  }
  0x33   :  { %398 = vperm.xlu0 %713, %v372_v36   ;;  %533 = vperm.xlu1 %714, %v515_v37  }
  0x37   :  { %403 = vperm.xlu0 %713, %v373_v38   ;;  %538 = vperm.xlu1 %714, %v516_v39  }
  0x3b   :  { %408 = vperm.xlu0 %713, %v374_v40   ;;  %543 = vperm.xlu1 %714, %v517_v41  }
  0x3f   :  { %413 = vperm.xlu0 %713, %v375_v42   ;;  %548 = vperm.xlu1 %714, %v518_v43  }
  0x43   :  { %553 = vperm.xlu0 %713, %v519_v44   ;;  %558 = vperm.xlu1 %714, %v520_v45  }
  0x47   :  { %585 = vperm.xlu0 %713, %v582_v46  }
  0x82   :  { %v133_v52 = vpop.permute.xlu1 %132  ;;  %v143_v54 = vpop.permute.xlu0 %142 }
  0x86   :  { %v138_v57 = vpop.permute.xlu1 %137  ;;  %v148_v59 = vpop.permute.xlu0 %147 }
  0x8a   :  { %v128_v62 = vpop.permute.xlu1 %127  ;;  %v123_v0 = vpop.permute.xlu0 %122 }
  0x8e   :  { %v118_v3 = vpop.permute.xlu1 %117  ;;  %v113_v6 = vpop.permute.xlu0 %112 }
  0x92   :  { %v108_v15 = vpop.permute.xlu1 %107  ;;  %v103_v20 = vpop.permute.xlu0 %102 }
  0x96   :  { %v98_v26 = vpop.permute.xlu1 %97  ;;  %v93_v30 = vpop.permute.xlu0 %92 }
  0x9a   :  { %v88_v36 = vpop.permute.xlu1 %87  ;;  %v83_v39 = vpop.permute.xlu0 %82 }
  0x9e   :  { %v78_v45 = vpop.permute.xlu1 %77 }
  0xd4   :  { %v945_v48 = vpop.f32.mrf.mxu0 }
  0xd5   :  { %v282_v43 = vadd.f32 %v945_v48, %v83_v39  ;;  %v728_v48 = vld [vmem:[%s969_s3 + $0x8] sm:$0xff]  }
  0xd6   :  { %v947_v49 = vpop.f32.mrf.mxu0 }
  0xd8   :  { %v674_v50 = vpop.f32.mrf.mxu0 }
  0xd9   :  { %v285_v40 = vadd.f32 %v674_v50, %v88_v36 }
  0xda   :  { %v949_v51 = vpop.f32.mrf.mxu0 }
  0xdb   :  { %v339_v46 = vmax.f32 %v285_v40, 0.0  ;;  %v277_v47 = vadd.f32 %v949_v51, %v78_v45  ;;  %v729_v51 = vld [vmem:[%s969_s3 + $0x10] sm:$0xff]  }
  0xdc   :  { %v677_v53 = vpop.f32.mrf.mxu0 }
  0xdd   :  { %v298_v31 = vadd.f32 %v677_v53, %v103_v20  ;;  %v73_v53 = vpop.permute.xlu0 %72  ;;  %v337_v50 = vmax.f32 %v277_v47, 0.0 }
  0xde   :  { %v289_v55 = vpop.f32.mrf.mxu0 }
  0xdf   :  { %v342_v37 = vmax.f32 %v298_v31, 0.0  ;;  %v290_v38 = vadd.f32 %v289_v55, %v93_v30  ;;  %v274_v55 = vadd.f32 %v947_v49, %v73_v53  ;;  %v730_v49 = vld [vmem:[%s969_s3 + $0x18] sm:$0xff]   ;;  %v588_v53 = vlaneseq  ;;  %s758_s3 = smov [#allocation3]  }
  0xe0   :  { %v678_v56 = vpop.f32.mrf.mxu0  ;;  %s606_s17 = sshll.u32 %s758_s3, 4  ;;  %s607_s17 = int_to_ptr.vmem [resolvable:$true] %s606_s17 }
  0xe1   :  { %v301_v27 = vadd.f32 %v678_v56, %v108_v15  ;;  %v340_v44 = vmax.f32 %v290_v38, 0.0  ;;  %s735_s18 = scalar_lea.vmem %s607_s17, 16  ;;  %s739_s19 = scalar_lea.vmem %s607_s17, 32 }
  0xe2   :  { %v292_v58 = vpop.f32.mrf.mxu0  ;;  %p736_p0 = scmp.ne.s32.totalorder %s607_s17, %s735_s18  ;;  %p740_p1 = scmp.lt.s32.totalorder %s607_s17, %s607_s17 }
  0xe3   :  { %v343_v33 = vmax.f32 %v301_v27, 0.0  ;;  %v293_v34 = vadd.f32 %v292_v58, %v98_v26  ;;  %p741_p2 = scmp.lt.s32.totalorder %s739_s19, %s735_s18 }
  0xe4   :  { %v681_v60 = vpop.f32.mrf.mxu0 }
  0xe5   :  { %v314_v16 = vadd.f32 %v681_v60, %v123_v0  ;;  %v363_v41 = vpack.c.bf16 %v343_v33, %v342_v37  ;;  %v341_v42 = vmax.f32 %v293_v34, 0.0  ;;  %v384_v60 = vpop.permute.xlu1 %383  ;;  %p742_p3 = por %p741_p2, %p740_p1 }
  0xe6   :  { %v305_v61 = vpop.f32.mrf.mxu0 }
  0xe7   :  { %v346_v24 = vmax.f32 %v314_v16, 0.0  ;;  %v306_v25 = vadd.f32 %v305_v61, %v113_v6  ;;  %p743_p4 = pnand %p742_p3, %p736_p0 }
  0xe8   :  { %v682_v63 = vpop.f32.mrf.mxu0 }
  0xe9   :  { %v317_v11 = vadd.f32 %v682_v63, %v128_v62  ;;  %v344_v32 = vmax.f32 %v306_v25, 0.0  ;;  %v394_v62 = vpop.permute.xlu1 %393 }
  0xea   :  { %v308_v1 = vpop.f32.mrf.mxu0 }
  0xeb   :  { %v347_v21 = vmax.f32 %v317_v11, 0.0  ;;  %v309_v22 = vadd.f32 %v308_v1, %v118_v3 }
  0xec   :  { %v685_v2 = vpop.f32.mrf.mxu0 }
  0xed   :  { %v330_v5 = vadd.f32 %v685_v2, %v143_v54  ;;  %v365_v28 = vpack.c.bf16 %v347_v21, %v346_v24  ;;  %v345_v29 = vmax.f32 %v309_v22, 0.0  ;;  %v338_v54 = vmax.f32 %v282_v43, 0.0  ;;  %v529_v0 = vpop.permute.xlu1 %528 }
  0xee   :  { %v321_v4 = vpop.f32.mrf.mxu0 }
  0xef   :  { %v322_v8 = vadd.f32 %v321_v4, %v133_v52  ;;  %v350_v12 = vmax.f32 %v330_v5, 0.0  ;;  %v364_v35 = vpack.c.bf16 %v345_v29, %v344_v32  ;;  %v362_v52 = vpack.c.bf16 %v341_v42, %v340_v44 }
  0xf0   :  { %v686_v7 = vpop.f32.mrf.mxu0  ;;  %v361_v56 = vpack.c.bf16 %v339_v46, %v338_v54 }
  0xf1   :  { %v333_v9 = vadd.f32 %v686_v7, %v148_v59  ;;  %v348_v17 = vmax.f32 %v322_v8, 0.0  ;;  %v379_v59 = vpop.permute.xlu0 %378  ;;  %v534_v2 = vpop.permute.xlu1 %533 }
  0xf2   :  { %v324_v10 = vpop.f32.mrf.mxu0 }
  0xf3   :  { %v351_v13 = vmax.f32 %v333_v9, 0.0  ;;  %v325_v14 = vadd.f32 %v324_v10, %v138_v57  ;;  %v336_v57 = vmax.f32 %v274_v55, 0.0 }
  0xf5   :  { %v349_v18 = vmax.f32 %v325_v14, 0.0  ;;  %v367_v19 = vpack.c.bf16 %v351_v13, %v350_v12  ;;  %v360_v58 = vpack.c.bf16 %v337_v50, %v336_v57  ;;  %v389_v61 = vpop.permute.xlu0 %388  ;;  %v539_v7 = vpop.permute.xlu1 %538 }
  0xf7   :  { %v366_v23 = vpack.c.bf16 %v349_v18, %v348_v17  ;;  %687 = vmatprep.subr.bf16.mxu1 %v367_v19 }
  0xf8   :  { %688 = vmatpush3.bf16.msra.mxu1 %v367_v19 }
  0xf9   :  { %689 = vmatprep.subr.bf16.mxu1 %v366_v23  ;;  %v524_v63 = vpop.permute.xlu0 %523  ;;  %v544_v18 = vpop.permute.xlu1 %543 }
  0xfc   :  { %690 = vmatpush3.bf16.msra.mxu1 %v366_v23 }
  0xfd   :  { %691 = vmatprep.subr.bf16.mxu1 %v365_v28  ;;  %v399_v1 = vpop.permute.xlu0 %398 }
 0x100   :  { %692 = vmatpush3.bf16.msra.mxu1 %v365_v28 }
 0x101   :  { %693 = vmatprep.subr.bf16.mxu1 %v364_v35  ;;  %v404_v4 = vpop.permute.xlu0 %403 }
 0x104   :  { %694 = vmatpush3.bf16.msra.mxu1 %v364_v35  ;;  %v549_v35 = vpop.permute.xlu1 %548 }
 0x105   :  { %695 = vmatprep.subr.bf16.mxu1 %v363_v41  ;;  %v409_v14 = vpop.permute.xlu0 %408 }
 0x108   :  { %696 = vmatpush3.bf16.msra.mxu1 %v363_v41  ;;  %v559_v46 = vpop.permute.xlu1 %558 }
 0x109   :  { %697 = vmatprep.subr.bf16.mxu1 %v362_v52  ;;  %v414_v29 = vpop.permute.xlu0 %413 }
 0x10c   :  { %698 = vmatpush3.bf16.msra.mxu1 %v362_v52 }
 0x10d   :  { %699 = vmatprep.subr.bf16.mxu1 %v361_v56  ;;  %v554_v43 = vpop.permute.xlu0 %553 }
 0x110   :  { %700 = vmatpush3.bf16.msra.mxu1 %v361_v56  ;;  %v589_v56 = vshrl.u32 %v588_v53, 7 }
 0x111   :  { %701 = vmatprep.subr.bf16.mxu1 %v360_v58 }
 0x114   :  { %702 = vmatpush3.bf16.msra.mxu1 %v360_v58  ;;  %v590_v58 = vsub.s32 0, %v589_v56 }
 0x117   :  { %704 = vmatmul.mubr.bf16.vlgmr.msra.gmra.mxu1 %v728_v48 }
 0x118   :  { %707 = vmatprep.mubr.bf16.mxu1 %v729_v51  ;;  %v586_v51 = vpop.permute.xlu0 %585 }
 0x11f   :  { %708 = vmatmul.mubr.bf16.gmra.mxu1 %v730_v49 }
 0x1d7   :  { %v705_v3 = vpop.f32.mrf.mxu1 }
 0x1d8   :  { %v483_v9 = vadd.f32 %v705_v3, %v389_v61 }
 0x1d9   :  { %v474_v5 = vpop.f32.mrf.mxu1 }
 0x1da   :  { %v475_v6 = vadd.f32 %v474_v5, %v379_v59  ;;  %v507_v16 = vmax.f32 %v483_v9, 0.0  ;;  %v591_v59 = vrot.slane %v586_v51, %v590_v58 }
 0x1db   :  { %v706_v8 = vpop.f32.mrf.mxu1 }
 0x1dc   :  { %v505_v11 = vmax.f32 %v475_v6, 0.0  ;;  %v486_v12 = vadd.f32 %v706_v8, %v394_v62  ;;  %v563_v25 = vmul.f32 %v534_v2, %v507_v16 }
 0x1dd   :  { %v477_v10 = vpop.f32.mrf.mxu1 }
 0x1de   :  { %v478_v13 = vadd.f32 %v477_v10, %v384_v60  ;;  %v561_v20 = vmul.f32 %v524_v63, %v505_v11  ;;  %v508_v21 = vmax.f32 %v486_v12, 0.0 }
 0x1df   :  { %v709_v15 = vpop.f32.mrf.mxu1 }
 0x1e0   :  { %v506_v17 = vmax.f32 %v478_v13, 0.0  ;;  %v499_v27 = vadd.f32 %v709_v15, %v409_v14  ;;  %v564_v31 = vmul.f32 %v539_v7, %v508_v21 }
 0x1e1   :  { %v490_v19 = vpop.f32.mrf.mxu1 }
 0x1e2   :  { %v562_v22 = vmul.f32 %v529_v0, %v506_v17  ;;  %v491_v23 = vadd.f32 %v490_v19, %v399_v1  ;;  %v511_v36 = vmax.f32 %v499_v27, 0.0 }
 0x1e3   :  { %v710_v24 = vpop.f32.mrf.mxu1 }
 0x1e4   :  { %v569_v26 = vadd.f32 %v562_v22, %v561_v20  ;;  %v509_v28 = vmax.f32 %v491_v23, 0.0  ;;  %v502_v33 = vadd.f32 %v710_v24, %v414_v29  ;;  %v567_v44 = vmul.f32 %v554_v43, %v511_v36 }
 0x1e5   :  { %v493_v30 = vpop.f32.mrf.mxu1 }
 0x1e6   :  { %v570_v32 = vadd.f32 %v569_v26, %v563_v25  ;;  %v494_v34 = vadd.f32 %v493_v30, %v404_v4  ;;  %v565_v37 = vmul.f32 %v544_v18, %v509_v28  ;;  %v512_v41 = vmax.f32 %v502_v33, 0.0 }
 0x1e8   :  { %v571_v38 = vadd.f32 %v570_v32, %v564_v31  ;;  %v510_v39 = vmax.f32 %v494_v34, 0.0  ;;  %v568_v47 = vmul.f32 %v559_v46, %v512_v41 }
 0x1ea   :  { %v572_v40 = vadd.f32 %v571_v38, %v565_v37  ;;  %v566_v42 = vmul.f32 %v549_v35, %v510_v39 }
 0x1ec   :  { %v573_v45 = vadd.f32 %v572_v40, %v566_v42 }
 0x1ee   :  { %v574_v52 = vadd.f32 %v573_v45, %v567_v44 }
 0x1f0   :  { %v575_v54 = vadd.f32 %v574_v52, %v568_v47 }
 0x1f2   :  { %v576_v55 = vrot.slane %v575_v54, 4 }
 0x1f4   :  { %v577_v50 = vadd.f32 %v576_v55, %v575_v54 }
 0x1f6   :  { %v578_v57 = vrot.slane %v577_v50, 2 }
 0x1f8   :  { %v579_v48 = vadd.f32 %v578_v57, %v577_v50 }
 0x1fa   :  { %v580_v49 = vrot.slane %v579_v48, 1 }
 0x1fc   :  { %v581_v60 = vadd.f32 %v580_v49, %v579_v48 }
 0x1fe   :  { %v592_v61 = vadd.f32 %v591_v59, %v581_v60 }
 0x200   :  { %v638_v62 = vmul.f32 -1.442695, %v592_v61 }
 0x202   :  { %731 = vpow2.f32 %v638_v62 }
 0x20f   :  { %v732_v63 = vpop.eup %731 }
 0x210   :  { %v596_v0 = vadd.f32 1.0, %v732_v63 }
 0x212   :  { %733 = vrcp.f32 %v596_v0 }
 0x21f   :  { %v734_v1 = vpop.eup %733 }
 0x220   :  { %599 = vst [vmem:[#allocation3] sm:$0x1] %v734_v1 }
 0x221   :  { %746 = shalt.err (!%p743_p4)
}
 0x222   :  { %609 = dma.vmem_to_hbm [thread:$0]  %s607_s17, 16, %s973_s7, [#allocation4]  }
 0x223   :  { %755 = dma.done.wait [#allocation4], 16  }
 0x224   :  { %756 = vsyncadd [#allocation4], 4294967280 }
 0x225   :  { %613 = vsyncpa [#allocation4], 1 }

</bundles_post_ra>
